<compile_context>
chip_gen: v5e
topology: v5e:2x2
jax: 0.10.0
libtpu: 0.0.40
codegen_flags: <defaults>
</compile_context>

<pallas_src>
import jax
import jax.numpy as jnp
from jax.experimental import pallas as pl
from jax.experimental.pallas import tpu as pltpu


def _round_up(x, m):
    return (x + m - 1) // m * m


# -----------------------------------------------------------------------------
# Pallas kernel: tiled matmul with bias folded into init (+ fused LeakyReLU)
# -----------------------------------------------------------------------------
def _make_matmul_bias_act_kernel(apply_act: bool, negative_slope: float):
    def kernel(x_ref, w_ref, b_ref, o_ref, acc_ref):
        @pl.when(pl.program_id(2) == 0)
        def _init():
            # bias folded into the accumulator init (saves the epilogue add)
            acc_ref[...] = jnp.broadcast_to(b_ref[...], acc_ref.shape)

        # bf16 x bf16 -> f32 accumulate on the MXU
        acc_ref[...] += jnp.dot(x_ref[...], w_ref[...],
                                preferred_element_type=jnp.float32)

        @pl.when(pl.program_id(2) == pl.num_programs(2) - 1)
        def _finalize():
            out = acc_ref[...]
            if apply_act:                                   # fused LeakyReLU
                out = jnp.where(out >= 0.0, out, negative_slope * out)
            o_ref[...] = out.astype(o_ref.dtype)            # lane-dense store

    return kernel


def _pick_tiles(M, KP, CP, out_bytes):
    """Tile selection: fill the 256-wide MXU when COUT allows, grow K/M tiles to
    amortize per-step pipeline overhead, keep footprint under v7x's scoped VMEM."""
    if CP % 512 == 0 and CP >= 1024:
        TN = 512
    elif CP % 256 == 0:
        TN = 256
    else:
        TN = 128

    TK = 128
    for cand in (2048, 1024, 512, 256):
        if KP % cand == 0:
            TK = cand
            break

    if M >= 4096:
        TM = 1024
    elif M >= 1024:
        TM = 512
    elif M >= 512:
        TM = 256                               # keep >=2 M tiles for megacore
    else:
        TM = max(128, _round_up(M, 16))        # bf16 sublane packing: mult of 16

    def footprint(tm, tk, tn):
        # double-buffered input/output tiles + f32 accumulator
        return 2 * (tm * tk * 2 + tk * tn * 2 + 8 * tn * 4 + tm * tn * out_bytes) \
            + tm * tn * 4

    budget = 24 * 1024 * 1024                  # headroom under v7x's 32 MiB scoped
    while footprint(TM, TK, TN) > budget and TK > 512:
        TK //= 2

    MP = _round_up(M, TM)
    return TM, TK, TN, MP


# -----------------------------------------------------------------------------
# NormConv2d forward, NHWC activations (norm='none'; weight_norm/spectral_norm
# are exact identities on the forward pass at init).
# -----------------------------------------------------------------------------
def pallas_norm_conv2d_nhwc(x_nhwc, w_oihw, b, *, stride=(1, 1), dilation=(1, 1),
                            padding=(0, 0), apply_act=False, negative_slope=0.2,
                            out_dtype=jnp.bfloat16):
    """Conv2d(+bias)(+LeakyReLU) as a single lane-dense Pallas matmul.

    x_nhwc : (N, H, W, CIN)      w_oihw : (COUT, CIN, KH, KW)      b : (COUT,)
    Returns (N, HO, WO, COUT) in `out_dtype` (NHWC kept end-to-end across layers).
    """
    N, H, W, CIN = x_nhwc.shape
    COUT, _, KH, KW = w_oihw.shape
    sh, sw = stride
    dh, dw = dilation
    ph, pw = padding

    HO = (H + 2 * ph - (dh * (KH - 1) + 1)) // sh + 1
    WO = (W + 2 * pw - (dw * (KW - 1) + 1)) // sw + 1
    K = CIN * KH * KW
    M = N * HO * WO                                                # batch folded into M

    # ---- glue: bf16 cast, zero pad, im2col (K ordered (kh, kw, cin)) ----
    xq = x_nhwc.astype(jnp.bfloat16)
    xp = jnp.pad(xq, ((0, 0), (ph, ph), (pw, pw), (0, 0)))
    cols = []
    for kh in range(KH):
        for kw in range(KW):
            h0, w0 = kh * dh, kw * dw
            cols.append(xp[:, h0:h0 + (HO - 1) * sh + 1:sh,
                              w0:w0 + (WO - 1) * sw + 1:sw, :])     # (N, HO, WO, CIN)
    patches = jnp.concatenate(cols, axis=-1).reshape(M, K)         # (M, K)

    KP = _round_up(K, 128)
    CP = _round_up(COUT, 128)
    out_bytes = jnp.dtype(out_dtype).itemsize
    TM, TK, TN, MP = _pick_tiles(M, KP, CP, out_bytes)

    patches = jnp.pad(patches, ((0, MP - M), (0, KP - K)))
    # weight flattened to (K, COUT) in matching (kh, kw, cin) order
    w2d = jnp.transpose(w_oihw, (2, 3, 1, 0)).reshape(K, COUT).astype(jnp.bfloat16)
    w2d = jnp.pad(w2d, ((0, KP - K), (0, CP - COUT)))
    b2d = jnp.pad(b.astype(jnp.float32), (0, CP - COUT)).reshape(1, CP)

    kernel = _make_matmul_bias_act_kernel(apply_act, float(negative_slope))

    vmem_bytes = (2 * (TM * TK * 2 + TK * TN * 2 + 8 * TN * 4 + TM * TN * out_bytes)
                  + TM * TN * 4)
    vmem_limit = int(min(max(int(vmem_bytes * 1.5), 16 * 1024 * 1024),
                         32 * 1024 * 1024))

    cost = pl.CostEstimate(
        flops=2 * MP * KP * CP,
        transcendentals=0,
        bytes_accessed=MP * KP * 2 + KP * CP * 2 + MP * CP * out_bytes)

    out2d = pl.pallas_call(
        kernel,
        out_shape=jax.ShapeDtypeStruct((MP, CP), out_dtype),
        grid_spec=pltpu.PrefetchScalarGridSpec(
            num_scalar_prefetch=0,
            grid=(MP // TM, CP // TN, KP // TK),
            in_specs=[
                pl.BlockSpec((TM, TK), lambda i, j, k: (i, k)),
                pl.BlockSpec((TK, TN), lambda i, j, k: (k, j)),
                pl.BlockSpec((1, TN), lambda i, j, k: (0, j)),
            ],
            out_specs=pl.BlockSpec((TM, TN), lambda i, j, k: (i, j)),
            scratch_shapes=[pltpu.VMEM((TM, TN), jnp.float32)],
        ),
        compiler_params=pltpu.CompilerParams(
            dimension_semantics=("parallel", "parallel", "arbitrary"),
            vmem_limit_bytes=vmem_limit,
            allow_input_fusion=[True, False, False]),   # fuse im2col into input DMAs
        cost_estimate=cost,
    )(patches, w2d, b2d)

    return out2d[:M, :COUT].reshape(N, HO, WO, COUT)     # stays NHWC


# -----------------------------------------------------------------------------
# Pure-XLA reference (same bf16 operand/output quantization) for checks
# -----------------------------------------------------------------------------
def _leaky_relu(x, negative_slope=0.2):
    return jnp.where(x >= 0.0, x, negative_slope * x)


def reference_norm_conv2d_nhwc(x_nhwc, w_oihw, b, *, stride=(1, 1), dilation=(1, 1),
                               padding=(0, 0), apply_act=False, negative_slope=0.2,
                               out_dtype=jnp.bfloat16):
    xq = x_nhwc.astype(jnp.bfloat16).astype(jnp.float32)
    wq = jnp.transpose(w_oihw.astype(jnp.bfloat16).astype(jnp.float32), (2, 3, 1, 0))
    ph, pw = padding
    out = jax.lax.conv_general_dilated(
        xq, wq, window_strides=stride, padding=((ph, ph), (pw, pw)),
        rhs_dilation=dilation, dimension_numbers=("NHWC", "HWIO", "NHWC"),
        preferred_element_type=jnp.float32)
    out = out + b.reshape(1, 1, 1, -1)
    if apply_act:
        out = _leaky_relu(out, negative_slope)
    return out.astype(out_dtype)


# -----------------------------------------------------------------------------
# MultiScaleSTFTDiscriminator forward (STFT + conv stacks)
# -----------------------------------------------------------------------------
def get_2d_padding(kernel_size, dilation=(1, 1)):
    return ((kernel_size[0] - 1) * dilation[0] // 2,
            (kernel_size[1] - 1) * dilation[1] // 2)


def spectrogram_nhwc(x, n_fft, hop_length, win_length, normalized=True):
    """torchaudio.Spectrogram(power=None, center=False, normalized=True) followed by
    cat([real, imag], dim=1) and rearrange 'b c w t -> b c t w', emitted in NHWC:
    x: (B, C, T) f32  ->  (B, n_frames, n_fft//2 + 1, 2*C) f32.
    """
    # TODO(synk): STFT (hann framing + rfft) has no Pallas TPU equivalent; kept in plain JAX.
    B, C, T = x.shape
    n = jnp.arange(win_length, dtype=jnp.float32)
    window = 0.5 * (1.0 - jnp.cos(2.0 * jnp.pi * n / win_length))   # periodic hann
    if win_length < n_fft:
        lpad = (n_fft - win_length) // 2
        window = jnp.pad(window, (lpad, n_fft - win_length - lpad))
    n_frames = 1 + (T - n_fft) // hop_length
    idx = jnp.arange(n_frames)[:, None] * hop_length + jnp.arange(n_fft)[None, :]
    frames = x[:, :, idx] * window[None, None, None, :]              # (B, C, F, n_fft)
    spec = jnp.fft.rfft(frames, axis=-1)                             # (B, C, F, bins)
    if normalized:
        spec = spec / jnp.sqrt(jnp.sum(window ** 2))
    z = jnp.concatenate([jnp.real(spec), jnp.imag(spec)], axis=1).astype(jnp.float32)
    return jnp.transpose(z, (0, 2, 3, 1))                            # (B, F, bins, 2C)


def init_conv_params(key, cin, cout, kh, kw):
    k_w, k_b = jax.random.split(key)
    fan_in = cin * kh * kw
    bound = 1.0 / (fan_in ** 0.5)
    w = jax.random.uniform(k_w, (cout, cin, kh, kw), jnp.float32, -bound, bound)
    b = jax.random.uniform(k_b, (cout,), jnp.float32, -bound, bound)
    return w, b


def build_discriminator_stft(key, filters, in_channels=1, out_channels=1,
                             kernel_size=(3, 9), dilations=(1, 2, 4),
                             stride=(1, 2), filters_scale=1, max_filters=1024):
    """Returns (params, layer_cfg): params holds only arrays (jit-traceable pytree);
    layer_cfg holds the static stride/dilation/padding structure."""
    # TODO(synk): weight_norm / spectral_norm only reparametrize the conv weight; at
    # init they are exact identities on the forward pass, so plain weights are used.
    kh, kw = kernel_size
    spec_channels = 2 * in_channels
    keys = jax.random.split(key, len(dilations) + 3)
    conv_params = [init_conv_params(keys[0], spec_channels, filters, kh, kw)]
    conv_cfg = [dict(stride=(1, 1), dilation=(1, 1),
                     padding=get_2d_padding(kernel_size))]
    in_chs = min(filters_scale * filters, max_filters)
    for i, d in enumerate(dilations):
        out_chs = min(filters_scale ** (i + 1) * filters, max_filters)
        conv_params.append(init_conv_params(keys[i + 1], in_chs, out_chs, kh, kw))
        conv_cfg.append(dict(stride=stride, dilation=(d, 1),
                             padding=get_2d_padding(kernel_size, (d, 1))))
        in_chs = out_chs
    out_chs = min(filters_scale ** (len(dilations) + 1) * filters, max_filters)
    conv_params.append(init_conv_params(keys[len(dilations) + 1], in_chs, out_chs, kh, kh))
    conv_cfg.append(dict(stride=(1, 1), dilation=(1, 1),
                         padding=get_2d_padding((kh, kh))))
    post_params = init_conv_params(keys[-1], out_chs, out_channels, kh, kh)
    post_cfg = dict(stride=(1, 1), dilation=(1, 1), padding=get_2d_padding((kh, kh)))
    return (dict(convs=conv_params, conv_post=post_params),
            dict(convs=conv_cfg, conv_post=post_cfg))


def discriminator_stft_forward(params, layer_cfg, x, n_fft, hop_length, win_length,
                               conv_fn, negative_slope=0.2):
    z = spectrogram_nhwc(x, n_fft, hop_length, win_length)
    fmap = []
    for (w, b), lc in zip(params["convs"], layer_cfg["convs"]):
        z = conv_fn(z, w, b, stride=lc["stride"], dilation=lc["dilation"],
                    padding=lc["padding"], apply_act=True,
                    negative_slope=negative_slope, out_dtype=jnp.bfloat16)
        fmap.append(z)
    w, b = params["conv_post"]
    pc = layer_cfg["conv_post"]
    z = conv_fn(z, w, b, stride=pc["stride"], dilation=pc["dilation"],
                padding=pc["padding"], apply_act=False, out_dtype=jnp.float32)
    # Module-compatible outputs: NCHW f32 (the chain itself stays NHWC / bf16).
    logits = jnp.transpose(z, (0, 3, 1, 2))
    fmap_nchw = [jnp.transpose(f.astype(jnp.float32), (0, 3, 1, 2)) for f in fmap]
    return logits, fmap_nchw


def multi_scale_stft_discriminator_forward(all_params, all_layer_cfgs, cfg, x, conv_fn):
    logits, fmaps = [], []
    for params, lcfg, n_fft, hop, win in zip(all_params, all_layer_cfgs,
                                             cfg["n_ffts"], cfg["hop_lengths"],
                                             cfg["win_lengths"]):
        z, fmap = discriminator_stft_forward(params, lcfg, x, n_fft, hop, win, conv_fn)
        logits.append(z)
        fmaps.append(fmap)
    return logits, fmaps


def build_jitted_forward(all_layer_cfgs, cfg, conv_fn):
    """Whole-forward jit: static layer configs closed over, params/x traced."""
    def fwd(all_params, x):
        return multi_scale_stft_discriminator_forward(all_params, all_layer_cfgs,
                                                      cfg, x, conv_fn)
    return jax.jit(fwd)


# -----------------------------------------------------------------------------
if __name__ == "__main__":
    key = jax.random.PRNGKey(0)
    k_unit, k_params, k_audio = jax.random.split(key, 3)

    # ---- unit checks of the Pallas conv kernel against XLA conv (NHWC) ----
    k1, k2, k3, k4 = jax.random.split(k_unit, 4)

    # (A) stride=1 / dilation=1, f32 output, tight tolerance
    xa = jax.random.normal(k1, (2, 16, 16, 4), jnp.float32)
    wa, ba = init_conv_params(k2, 4, 8, 3, 3)
    oa = pallas_norm_conv2d_nhwc(xa, wa, ba, stride=(1, 1), dilation=(1, 1),
                                 padding=(1, 1), apply_act=True,
                                 out_dtype=jnp.float32)
    ra = reference_norm_conv2d_nhwc(xa, wa, ba, stride=(1, 1), dilation=(1, 1),
                                    padding=(1, 1), apply_act=True,
                                    out_dtype=jnp.float32)
    oa = jax.block_until_ready(oa)
    assert oa.shape == (2, 16, 16, 8)
    assert jnp.allclose(oa, ra, atol=2e-3, rtol=2e-3), "conv A mismatch"

    # (B) strided + dilated layer like the real STFT discriminator, bf16 output
    xb = jax.random.normal(k3, (2, 12, 20, 8), jnp.float32)
    wb, bb = init_conv_params(k4, 8, 8, 3, 9)
    pad_b = get_2d_padding((3, 9), (2, 1))
    ob = pallas_norm_conv2d_nhwc(xb, wb, bb, stride=(1, 2), dilation=(2, 1),
                                 padding=pad_b, apply_act=True,
                                 out_dtype=jnp.bfloat16)
    rb = reference_norm_conv2d_nhwc(xb, wb, bb, stride=(1, 2), dilation=(2, 1),
                                    padding=pad_b, apply_act=True,
                                    out_dtype=jnp.bfloat16)
    ob = jax.block_until_ready(ob)
    assert ob.shape == (2, 12, 10, 8)
    assert jnp.allclose(ob.astype(jnp.float32), rb.astype(jnp.float32),
                        atol=2e-2, rtol=2e-2), "conv B mismatch"

    # ---- full MultiScaleSTFTDiscriminator forward at small scale ----
    cfg = dict(filters=8, in_channels=1, out_channels=1,
               n_ffts=[64, 128], hop_lengths=[16, 32], win_lengths=[64, 128])
    disc_keys = jax.random.split(k_params, len(cfg["n_ffts"]))
    built = [build_discriminator_stft(dk, cfg["filters"], cfg["in_channels"],
                                      cfg["out_channels"]) for dk in disc_keys]
    all_params = [p for p, _ in built]
    all_layer_cfgs = [c for _, c in built]

    B, T = 2, 512
    audio = 0.5 * jax.random.normal(k_audio, (B, cfg["in_channels"], T), jnp.float32)

    pallas_fwd = build_jitted_forward(all_layer_cfgs, cfg, pallas_norm_conv2d_nhwc)
    ref_fwd = build_jitted_forward(all_layer_cfgs, cfg, reference_norm_conv2d_nhwc)

    logits, fmaps = jax.block_until_ready(pallas_fwd(all_params, audio))
    logits_ref, fmaps_ref = jax.block_until_ready(ref_fwd(all_params, audio))

    assert len(logits) == len(cfg["n_ffts"]) and len(fmaps) == len(cfg["n_ffts"])
    for lp, lr, fp_, fr_ in zip(logits, logits_ref, fmaps, fmaps_ref):
        assert lp.shape == lr.shape
        assert len(fp_) == len(fr_) == 5
        assert bool(jnp.all(jnp.isfinite(lp)))
        assert jnp.allclose(lp, lr, atol=5e-2, rtol=5e-2), "logits mismatch"
        for a, r in zip(fp_, fr_):
            assert a.shape == r.shape

    print("KERNEL_OK")
</pallas_src>

<mosaic_0001>
module attributes {stable_mosaic.version = 11 : i64} {
  func.func @kernel(%arg0: i32, %arg1: i32, %arg2: i32, %arg3: memref<256x128xbf16, #tpu.memory_space<vmem>>, %arg4: memref<128x128xbf16, #tpu.memory_space<vmem>>, %arg5: memref<1x128xf32, #tpu.memory_space<vmem>>, %arg6: memref<256x128xf32, #tpu.memory_space<vmem>>, %arg7: memref<256x128xf32, #tpu.memory_space<vmem>>) attributes {dimension_semantics = [#tpu.dimension_semantics<parallel>, #tpu.dimension_semantics<parallel>, #tpu.dimension_semantics<arbitrary>], iteration_bounds = array<i64: 2, 1, 1>, scalar_prefetch = 0 : i64, scratch_operands = 1 : i64, tpu.core_type = #tpu.core_type<tc>, window_params = [{transform_indices = @transform_0, window_bounds = array<i64: 256, 128>}, {transform_indices = @transform_1, window_bounds = array<i64: 128, 128>}, {transform_indices = @transform_2, window_bounds = array<i64: 1, 128>}, {transform_indices = @transform_3, window_bounds = array<i64: 256, 128>}]} {
    %c0_i32 = arith.constant 0 : i32
    %0 = arith.cmpi eq, %arg2, %c0_i32 : i32
    %1 = arith.extui %0 : i1 to i32
    %c0_i32_0 = arith.constant 0 : i32
    %2 = arith.cmpi ne, %1, %c0_i32_0 : i32
    scf.if %2 {
      %c0_10 = arith.constant 0 : index
      %c0_11 = arith.constant 0 : index
      %12 = vector.load %arg5[%c0_10, %c0_11] : memref<1x128xf32, #tpu.memory_space<vmem>>, vector<1x128xf32>
      %13 = vector.shape_cast %12 : vector<1x128xf32> to vector<1x128xf32>
      %14 = vector.broadcast %13 : vector<1x128xf32> to vector<256x128xf32>
      %c0_12 = arith.constant 0 : index
      %c0_13 = arith.constant 0 : index
      %15 = vector.load %arg7[%c0_12, %c0_13] : memref<256x128xf32, #tpu.memory_space<vmem>>, vector<256x128xf32>
      tpu.vector_store %arg7[%c0_12, %c0_13], %14 {strides = array<i32>} : memref<256x128xf32, #tpu.memory_space<vmem>>, vector<256x128xf32>,
    } else {
    }
    %c0 = arith.constant 0 : index
    %c0_1 = arith.constant 0 : index
    %3 = vector.load %arg7[%c0, %c0_1] : memref<256x128xf32, #tpu.memory_space<vmem>>, vector<256x128xf32>
    %c0_2 = arith.constant 0 : index
    %c0_3 = arith.constant 0 : index
    %4 = vector.load %arg3[%c0_2, %c0_3] : memref<256x128xbf16, #tpu.memory_space<vmem>>, vector<256x128xbf16>
    %c0_4 = arith.constant 0 : index
    %c0_5 = arith.constant 0 : index
    %5 = vector.load %arg4[%c0_4, %c0_5] : memref<128x128xbf16, #tpu.memory_space<vmem>>, vector<128x128xbf16>
    %cst = arith.constant dense<0.000000e+00> : vector<256x128xf32>
    %6 = tpu.matmul %4, %5, %cst {dimension_numbers = #tpu.dot_dimension_numbers<[1], [0], [0], [1], [0, 0, 1, 1], [], []>} : vector<256x128xbf16>, vector<128x128xbf16>, vector<256x128xf32> -> vector<256x128xf32>
    %7 = arith.addf %3, %6 : vector<256x128xf32>
    %c0_6 = arith.constant 0 : index
    %c0_7 = arith.constant 0 : index
    %8 = vector.load %arg7[%c0_6, %c0_7] : memref<256x128xf32, #tpu.memory_space<vmem>>, vector<256x128xf32>
    tpu.vector_store %arg7[%c0_6, %c0_7], %7 {strides = array<i32>} : memref<256x128xf32, #tpu.memory_space<vmem>>, vector<256x128xf32>,
    %c0_i32_8 = arith.constant 0 : i32
    %9 = arith.cmpi eq, %arg2, %c0_i32_8 : i32
    %10 = arith.extui %9 : i1 to i32
    %c0_i32_9 = arith.constant 0 : i32
    %11 = arith.cmpi ne, %10, %c0_i32_9 : i32
    scf.if %11 {
      %c0_10 = arith.constant 0 : index
      %c0_11 = arith.constant 0 : index
      %12 = vector.load %arg7[%c0_10, %c0_11] : memref<256x128xf32, #tpu.memory_space<vmem>>, vector<256x128xf32>
      %cst_12 = arith.constant 0.000000e+00 : f32
      %13 = vector.broadcast %cst_12 : f32 to vector<256x128xf32>
      %14 = arith.cmpf oge, %12, %13 : vector<256x128xf32>
      %cst_13 = arith.constant 2.000000e-01 : f32
      %15 = vector.broadcast %cst_13 : f32 to vector<256x128xf32>
      %16 = arith.mulf %15, %12 : vector<256x128xf32>
      %17 = arith.select %14, %12, %16 : vector<256x128xi1>, vector<256x128xf32>
      %c0_14 = arith.constant 0 : index
      %c0_15 = arith.constant 0 : index
      %18 = vector.load %arg6[%c0_14, %c0_15] : memref<256x128xf32, #tpu.memory_space<vmem>>, vector<256x128xf32>
      tpu.vector_store %arg6[%c0_14, %c0_15], %17 {strides = array<i32>} : memref<256x128xf32, #tpu.memory_space<vmem>>, vector<256x128xf32>,
    } else {
    }
    return
  }
  func.func @transform_0(%arg0: i32, %arg1: i32, %arg2: i32) -> (i32, i32) {
    %c0_i32 = arith.constant 0 : i32
    return %arg0, %arg2 : i32, i32
  }
  func.func @transform_1(%arg0: i32, %arg1: i32, %arg2: i32) -> (i32, i32) {
    %c0_i32 = arith.constant 0 : i32
    return %arg2, %arg1 : i32, i32
  }
  func.func @transform_2(%arg0: i32, %arg1: i32, %arg2: i32) -> (i32, i32) {
    %c0_i32 = arith.constant 0 : i32
    %c0_i32_0 = arith.constant 0 : i32
    return %c0_i32, %arg1 : i32, i32
  }
  func.func @transform_3(%arg0: i32, %arg1: i32, %arg2: i32) -> (i32, i32) {
    %c0_i32 = arith.constant 0 : i32
    return %arg0, %arg1 : i32, i32
  }
}

</mosaic_0001>

<bundles_post_ra>
// kernel: tpu_custom_call.1
= control target key start
LH: loop header
LB: loop body
LE: loop exit
PB: predicated region body
PF: predicated region fallthrough
CT: control target
= control target key end

     0   :  { %s1632_s0 = inlined_call_operand.hbm [shape: bf16[512,128], index: 0, kind: input, shape index: {}]   ;;  %s1633_s1 = inlined_call_operand.hbm [shape: bf16[128,128], index: 1, kind: input, shape index: {}]   ;;  %s1634_s2 = inlined_call_operand.vmem [shape: f32[1,128], index: 2, kind: input, shape index: {}]   ;;  %s1635_s3 = inlined_call_operand.hbm [shape: f32[512,128], index: 3, kind: output, shape index: {}]  }
   0x1   :  { %1637 = sst [smem:[#allocation12_spill]] %s1633_s1 }
   0x2   :  { %8 = vsyncpa [#allocation4], 0 }
   0x3   :  { %10 = vsyncpa [#allocation4 + $0x1], 0 }
   0x4   :  { %11 = vsyncpa [#allocation7], 0 }
   0x5   :  { %12 = vsyncpa [#allocation5], 0 }
   0x6   :  { %14 = vsyncpa [#allocation5 + $0x1], 0  ;;  %s1386_s12 = smov 0   ;;  %s1388_s13 = smov 0  }
   0x7   :  { %s1390_s14 = smov 0   ;;  %s1392_s15 = smov 0  }
   0x8   :  { %s1394_s16 = smov 0   ;;  %s1396_s17 = smov 0  }
   0x9 LB: > { %s971_s18 = sadd.s32 4294967295, %s1359_s17   ;;  %s972_s19 = sadd.s32 4294967294, %s1359_s17   ;;  %s1359_s17 = sphi %s1396_s17, %s20_s17   ;;  %s1355_s16 = sphi %s1394_s16, %s1651_s16   ;;  %s1351_s15 = sphi %s1392_s15, %s1650_s15   ;;  %s1347_s14 = sphi %s1390_s14, %s1649_s14   ;;  %s1343_s13 = sphi %s1388_s13, %s1648_s13   ;;  %s1339_s12 = sphi %s1386_s12, %s1647_s12  }
   0xa   : > { %p61_p0 = scmp.ne.s32.totalorder %s1343_s13, %s1339_s12  ;;  %p1420_p1 = scmp.eq.s32.totalorder %s971_s18, 0 }
   0xb   : > { %p1424_p2 = scmp.eq.s32.totalorder %s971_s18, 1  ;;  %p147_p3 = scmp.eq.s32.totalorder %s972_s19, 1 }
   0xc   : > { %p1430_p4 = por %p1420_p1, %p61_p0  ;;  %p973_p5 = scmp.ge.s32.totalorder %s1359_s17, 1 }
   0xd   : > { %p1435_p6 = por %p147_p3, %p61_p0  ;;  %p154_p7 = scmp.lt.s32.totalorder %s1359_s17, 3 }
   0xe   : > { %s1642_s1 = sld [smem:[#allocation12_spill]]  ;;  %s1361_s28 = smov [#allocation6]  }
   0xf   : > { %p1443_p8 = pnand %p973_p5, %p154_p7  ;;  %s171_s29 = sshll.u32 %s1361_s28, 4  ;;  %s172_s29 = int_to_ptr.vmem [resolvable:$true] %s171_s29 }
  0x10   : > { %p976_p11 = scmp.ge.s32.totalorder %s1359_s17, 2  ;;  %s1636_s30 = smov 64  }
  0x11   : > { %p1143_p9 = pneg %p1443_p8  ;;  %s1363_s4 = smov 4  }
  0x12   : > { %s39_s5 = sadd.s32 1, %s1355_s16  ;;  %s48_s6 = sadd.s32 1, %s1347_s14 }
  0x13   : > { %p1144_p10 = pnand %p1143_p9, %p1420_p1  ;;  %p41_p12 = scmp.ge.s32.totalorder %s39_s5, 2 }
  0x14   : > { %s169_s26 = sshll.u32 %s1642_s1, 4  ;;  %p55_p13 = scmp.ne.s32.totalorder %s1347_s14, %s1343_s13  ;;  %s170_s26 = int_to_ptr.hbm [resolvable:$true] %s169_s26 }
  0x15   : > { %1146 = dma.hbm_to_vmem [thread:$0]  (!%p1144_p10), %s170_s26, 1024, %s172_s29, [#allocation7], %s1636_s30, %s1636_s30, %s1363_s4  }
  0x16   : > { %p56_p0 = scmp.eq.s32.totalorder %s1359_s17, 0  ;;  %s1653_s5 = smov (%p41_p12, %s39_s5), 0 }
  0x17   : > { %p1468_p5 = por %p1424_p2, %p55_p13  ;;  %s43_s9 = ssub.s32 %s1355_s16, %s1653_s5 }
  0x18   : > { %p1462_p3 = por %p56_p0, %p55_p13  ;;  %p1156_p7 = scmp.lt.s32.totalorder %s1359_s17, 2 }
  0x19   : > { %p46_p9 = scmp.eq.s32.totalorder %s43_s9, 0  ;;  %s191_s10 = sand.u32 1, %s1347_s14  }
  0x1a   : > { %s977_s11 = sshll.u32 %s191_s10, 7  ;;  %s1085_s19 = sshll.u32 %s1355_s16, 7 }
  0x1b   : > { %s1477_s18 = scalar_select %p46_p9, %s1347_s14, %s48_s6  }
  0x1c   : > { %s201_s26 = scalar_lea.hbm %s1632_s0, %s1085_s19  ;;  %s195_s28 = scalar_lea.vmem [#allocation3], %s977_s11 }
  0x1d   : > { %s204_s29 = sshll.u32 %s195_s28, 4  ;;  %s202_s21 = sshll.u32 %s201_s26, 4  ;;  %s205_s29 = int_to_ptr.vmem [resolvable:$true] %s204_s29  ;;  %s203_s21 = int_to_ptr.hbm [resolvable:$true] %s202_s21 }
  0x1e   : > { %p1148_p2 = pnand %p1156_p7, %p1462_p3  ;;  %s192_s30 = scalar_lea.sflag [#allocation4], %s191_s10 }
  0x1f   : > { %s1646_s1 = smov 64   ;;  %216 = sbr.rel (%p1443_p8) target bundleno = 270 (0x10e), region = 32 }
  0x20   : > { %1150 = dma.hbm_to_vmem [thread:$0]  (!%p1148_p2), %s203_s21, 2048, %s205_s29, %s192_s30, %s1646_s1, %s1646_s1, %s1363_s4  }
  0x21   : > { %s1491_s6 = sand.u32 (!%p1443_p8), 1, %s1343_s13  }
  0x22   : > { %s981_s9 = sshll.u32 (!%p1443_p8), %s1491_s6, 7  ;;  %s219_s11 = scalar_lea.sflag (!%p1443_p8), [#allocation4], %s1491_s6 }
  0x23   : > { %s1495_s19 = scalar_lea.vmem (!%p1443_p8), [#allocation3], %s981_s9 }
  0x24   : > { %1326 = dma.done.wait (%p1430_p4), %s219_s11, 2048  }
  0x25   : > { %1328 = vsyncadd (%p1430_p4), %s219_s11, 4294965248 }
  0x26   : > { %1330 = dma.done.wait (%p1420_p1), [#allocation7], 1024  }
  0x27   : > { %1332 = vsyncadd (%p1420_p1), [#allocation7], 4294966272  ;;  %v1109_v0 = vld [vmem:[#allocation6 + $0x38] sm:$0xff]  ;;  %v1108_v1 = vld [vmem:[#allocation6 + $0x30] sm:$0xff]  ;;  %s983_s22 = sshll.u32 %s1491_s6, 8  ;;  %s1110_s30 = sshll.u32 %s1351_s15, 8 }
  0x28   : > { %524 = vmatpush.bf16.msra.mxu0 %v1109_v0  ;;  %1111 = vmatpush.bf16.msra.mxu1 %v1109_v0  ;;  %v1107_v2 = vld [vmem:[#allocation6 + $0x28] sm:$0xff]  ;;  %v1106_v3 = vld [vmem:[#allocation6 + $0x20] sm:$0xff]  ;;  %v1105_v4 = vld [vmem:[#allocation6 + $0x18] sm:$0xff]  ;;  %s1529_s27 = scalar_lea.vmem [#allocation8], %s983_s22  ;;  %s853_s15 = scalar_lea.hbm %s1635_s3, %s1110_s30 }
  0x29   : > { %1112 = vmatpush.bf16.msra.mxu2 %v1109_v0  ;;  %1113 = vmatpush.bf16.msra.mxu3 %v1109_v0  ;;  %v1104_v5 = vld [vmem:[#allocation6 + $0x10] sm:$0xff]  ;;  %v1103_v6 = vld [vmem:[#allocation6 + $0x8] sm:$0xff]  ;;  %v1102_v7 = vld [vmem:[#allocation6] sm:$0xff]  ;;  %s854_s10 = sshll.u32 %s1529_s27, 4  ;;  %s856_s24 = sshll.u32 %s853_s15, 4  ;;  %s855_s10 = int_to_ptr.vmem [resolvable:$true] %s854_s10  ;;  %s857_s24 = int_to_ptr.hbm [resolvable:$true] %s856_s24 }
  0x2a   : > { %v1086_v8 = vld [vmem:[%s1495_s19] sm:$0xff]  ;;  %v1087_v12 = vld [vmem:[%s1495_s19 + $0x8] sm:$0xff]  ;;  %v1088_v16 = vld [vmem:[%s1495_s19 + $0x10] sm:$0xff]  ;;  %s841_s25 = scalar_lea.sflag [#allocation5], %s1491_s6  ;;  %s1287_s26 = sshra.s32 %s857_s24, 4  ;;  %s1288_s26 = int_to_ptr.hbm [resolvable:$true] %s1287_s26 }
  0x2b   : > { %v1090_v9 = vld [vmem:[%s1495_s19 + $0x20] sm:$0xff]  ;;  %v1091_v13 = vld [vmem:[%s1495_s19 + $0x28] sm:$0xff]  ;;  %v1092_v17 = vld [vmem:[%s1495_s19 + $0x30] sm:$0xff]  ;;  %s1289_s28 = scalar_lea.hbm %s1288_s26, 256  ;;  %s1293_s9 = scalar_lea.hbm %s1635_s3, 512 }
  0x2c   : > { %525 = vmatpush.bf16.msra.mxu0 %v1108_v1  ;;  %1114 = vmatpush.bf16.msra.mxu1 %v1108_v1  ;;  %v1094_v10 = vld [vmem:[%s1495_s19 + $0x40] sm:$0xff]  ;;  %v1095_v14 = vld [vmem:[%s1495_s19 + $0x48] sm:$0xff]  ;;  %v1096_v18 = vld [vmem:[%s1495_s19 + $0x50] sm:$0xff]  ;;  %p1290_p1 = scmp.ne.s32.totalorder %s1288_s26, %s1289_s28  ;;  %p1294_p10 = scmp.lt.s32.totalorder %s1288_s26, %s1635_s3 }
  0x2d   : > { %1115 = vmatpush.bf16.msra.mxu2 %v1108_v1  ;;  %1116 = vmatpush.bf16.msra.mxu3 %v1108_v1  ;;  %v1098_v11 = vld [vmem:[%s1495_s19 + $0x60] sm:$0xff]  ;;  %v1099_v15 = vld [vmem:[%s1495_s19 + $0x68] sm:$0xff]  ;;  %v1100_v19 = vld [vmem:[%s1495_s19 + $0x70] sm:$0xff]  ;;  %p1295_p12 = scmp.lt.s32.totalorder %s1293_s9, %s1289_s28 }
  0x2e   : > { %v1089_v20 = vld [vmem:[%s1495_s19 + $0x18] sm:$0xff]  ;;  %v1524_v24 = vld [vmem:[%s1634_s2] ss:$0 sm:$0xff]  ;;  %p1291_p4 = pnand %p1290_p1, %p1468_p5 }
  0x2f   : > { %v1093_v21 = vld [vmem:[%s1495_s19 + $0x38] sm:$0xff]  ;;  %p1296_p13 = por %p1295_p12, %p1294_p10 }
  0x30   : > { %526 = vmatpush.bf16.msra.mxu0 %v1107_v2  ;;  %1117 = vmatpush.bf16.msra.mxu1 %v1107_v2  ;;  %v1097_v22 = vld [vmem:[%s1495_s19 + $0x58] sm:$0xff]  ;;  %p1292_p8 = pneg %p1291_p4 }
  0x31   : > { %1118 = vmatpush.bf16.msra.mxu2 %v1107_v2  ;;  %1119 = vmatpush.bf16.msra.mxu3 %v1107_v2  ;;  %v1101_v23 = vld [vmem:[%s1495_s19 + $0x78] sm:$0xff] }
  0x32   : > { %p1297_p0 = pnand %p1296_p13, %p1292_p8 }
  0x34   : > { %527 = vmatpush.bf16.msra.mxu0 %v1106_v3  ;;  %1120 = vmatpush.bf16.msra.mxu1 %v1106_v3 }
  0x35   : > { %1121 = vmatpush.bf16.msra.mxu2 %v1106_v3  ;;  %1122 = vmatpush.bf16.msra.mxu3 %v1106_v3 }
  0x38   : > { %528 = vmatpush.bf16.msra.mxu0 %v1105_v4  ;;  %1123 = vmatpush.bf16.msra.mxu1 %v1105_v4 }
  0x39   : > { %1124 = vmatpush.bf16.msra.mxu2 %v1105_v4  ;;  %1125 = vmatpush.bf16.msra.mxu3 %v1105_v4 }
  0x3c   : > { %529 = vmatpush.bf16.msra.mxu0 %v1104_v5  ;;  %1126 = vmatpush.bf16.msra.mxu1 %v1104_v5 }
  0x3d   : > { %1127 = vmatpush.bf16.msra.mxu2 %v1104_v5  ;;  %1128 = vmatpush.bf16.msra.mxu3 %v1104_v5 }
  0x40   : > { %530 = vmatpush.bf16.msra.mxu0 %v1103_v6  ;;  %1129 = vmatpush.bf16.msra.mxu1 %v1103_v6 }
  0x41   : > { %1130 = vmatpush.bf16.msra.mxu2 %v1103_v6  ;;  %1131 = vmatpush.bf16.msra.mxu3 %v1103_v6 }
  0x44   : > { %531 = vmatpush.bf16.msra.mxu0 %v1102_v7  ;;  %1132 = vmatpush.bf16.msra.mxu1 %v1102_v7 }
  0x45   : > { %1133 = vmatpush.bf16.msra.mxu2 %v1102_v7  ;;  %1134 = vmatpush.bf16.msra.mxu3 %v1102_v7 }
  0x47   : > { %532 = vmatmul.bf16.vlgmr.msra.gmra.mxu0 %v1086_v8  ;;  %552 = vmatmul.bf16.vlgmr.msra.gmra.mxu1 %v1090_v9 }
  0x48   : > { %572 = vmatmul.bf16.vlgmr.msra.gmra.mxu2 %v1094_v10  ;;  %592 = vmatmul.bf16.vlgmr.msra.gmra.mxu3 %v1098_v11 }
  0x57   : > { %537 = vmatmul.bf16.gmra.mxu0 %v1087_v12  ;;  %557 = vmatmul.bf16.gmra.mxu1 %v1091_v13 }
  0x58   : > { %577 = vmatmul.bf16.gmra.mxu2 %v1095_v14  ;;  %597 = vmatmul.bf16.gmra.mxu3 %v1099_v15 }
  0x67   : > { %542 = vmatmul.bf16.gmra.mxu0 %v1088_v16  ;;  %562 = vmatmul.bf16.gmra.mxu1 %v1092_v17 }
  0x68   : > { %582 = vmatmul.bf16.gmra.mxu2 %v1096_v18  ;;  %602 = vmatmul.bf16.gmra.mxu3 %v1100_v19 }
  0x77   : > { %547 = vmatmul.bf16.gmra.mxu0 %v1089_v20  ;;  %567 = vmatmul.bf16.gmra.mxu1 %v1093_v21 }
  0x78   : > { %587 = vmatmul.bf16.gmra.mxu2 %v1097_v22  ;;  %607 = vmatmul.bf16.gmra.mxu3 %v1101_v23 }
  0xc4   : > { %v533_v25 = vpop.f32.mrf.mxu0  ;;  %v553_v26 = vpop.f32.mrf.mxu1 }
  0xc5   : > { %v613_v27 = vadd.f32 %v1524_v24, %v533_v25  ;;  %v621_v28 = vadd.f32 %v1524_v24, %v553_v26 }
  0xc7   : > { %vm712_vm0 = vcmp.ge.f32.partialorder %v613_v27, 0.0  ;;  %v744_v29 = vmul.f32 0.2, %v613_v27  ;;  %vm720_vm1 = vcmp.ge.f32.partialorder %v621_v28, 0.0  ;;  %v752_v30 = vmul.f32 0.2, %v621_v28 }
  0xc9   : > { %v776_v31 = vsel %vm712_vm0, %v613_v27, %v744_v29  ;;  %v784_v32 = vsel %vm720_vm1, %v621_v28, %v752_v30 }
  0xca   : > { %808 = vst [vmem:[%s1529_s27] sm:$0xff] %v776_v31 }
  0xcb   : > { %816 = vst [vmem:[%s1529_s27 + $0x40] sm:$0xff] %v784_v32  ;;  %v573_v33 = vpop.f32.mrf.mxu2  ;;  %v593_v34 = vpop.f32.mrf.mxu3 }
  0xcc   : > { %v629_v35 = vadd.f32 %v1524_v24, %v573_v33  ;;  %v637_v36 = vadd.f32 %v1524_v24, %v593_v34  ;;  %v535_v37 = vpop.f32.mrf.mxu0  ;;  %v555_v38 = vpop.f32.mrf.mxu1 }
  0xcd   : > { %v614_v39 = vadd.f32 %v1524_v24, %v535_v37  ;;  %v622_v40 = vadd.f32 %v1524_v24, %v555_v38 }
  0xce   : > { %vm728_vm2 = vcmp.ge.f32.partialorder %v629_v35, 0.0  ;;  %v760_v41 = vmul.f32 0.2, %v629_v35  ;;  %vm736_vm3 = vcmp.ge.f32.partialorder %v637_v36, 0.0  ;;  %v768_v42 = vmul.f32 0.2, %v637_v36 }
  0xcf   : > { %vm713_vm4 = vcmp.ge.f32.partialorder %v614_v39, 0.0  ;;  %v745_v43 = vmul.f32 0.2, %v614_v39  ;;  %vm721_vm5 = vcmp.ge.f32.partialorder %v622_v40, 0.0  ;;  %v753_v44 = vmul.f32 0.2, %v622_v40 }
  0xd0   : > { %v792_v45 = vsel %vm728_vm2, %v629_v35, %v760_v41  ;;  %v800_v46 = vsel %vm736_vm3, %v637_v36, %v768_v42 }
  0xd1   : > { %824 = vst [vmem:[%s1529_s27 + $0x80] sm:$0xff] %v792_v45  ;;  %v777_v47 = vsel %vm713_vm4, %v614_v39, %v745_v43  ;;  %v785_v48 = vsel %vm721_vm5, %v622_v40, %v753_v44 }
  0xd2   : > { %832 = vst [vmem:[%s1529_s27 + $0xc0] sm:$0xff] %v800_v46 }
  0xd3   : > { %809 = vst [vmem:[%s1529_s27 + $0x8] sm:$0xff] %v777_v47  ;;  %v575_v49 = vpop.f32.mrf.mxu2  ;;  %v595_v50 = vpop.f32.mrf.mxu3 }
  0xd4   : > { %817 = vst [vmem:[%s1529_s27 + $0x48] sm:$0xff] %v785_v48  ;;  %v630_v51 = vadd.f32 %v1524_v24, %v575_v49  ;;  %v638_v52 = vadd.f32 %v1524_v24, %v595_v50  ;;  %v538_v53 = vpop.f32.mrf.mxu0  ;;  %v558_v54 = vpop.f32.mrf.mxu1 }
  0xd5   : > { %v615_v55 = vadd.f32 %v1524_v24, %v538_v53  ;;  %v623_v56 = vadd.f32 %v1524_v24, %v558_v54 }
  0xd6   : > { %vm729_vm6 = vcmp.ge.f32.partialorder %v630_v51, 0.0  ;;  %v761_v57 = vmul.f32 0.2, %v630_v51  ;;  %vm737_vm7 = vcmp.ge.f32.partialorder %v638_v52, 0.0  ;;  %v769_v58 = vmul.f32 0.2, %v638_v52 }
  0xd7   : > { %vm714_vm8 = vcmp.ge.f32.partialorder %v615_v55, 0.0  ;;  %v746_v59 = vmul.f32 0.2, %v615_v55  ;;  %vm722_vm9 = vcmp.ge.f32.partialorder %v623_v56, 0.0  ;;  %v754_v60 = vmul.f32 0.2, %v623_v56 }
  0xd8   : > { %v793_v61 = vsel %vm729_vm6, %v630_v51, %v761_v57  ;;  %v801_v62 = vsel %vm737_vm7, %v638_v52, %v769_v58 }
  0xd9   : > { %825 = vst [vmem:[%s1529_s27 + $0x88] sm:$0xff] %v793_v61  ;;  %v778_v63 = vsel %vm714_vm8, %v615_v55, %v746_v59  ;;  %v786_v0 = vsel %vm722_vm9, %v623_v56, %v754_v60 }
  0xda   : > { %833 = vst [vmem:[%s1529_s27 + $0xc8] sm:$0xff] %v801_v62 }
  0xdb   : > { %810 = vst [vmem:[%s1529_s27 + $0x10] sm:$0xff] %v778_v63  ;;  %v578_v1 = vpop.f32.mrf.mxu2  ;;  %v598_v2 = vpop.f32.mrf.mxu3 }
  0xdc   : > { %818 = vst [vmem:[%s1529_s27 + $0x50] sm:$0xff] %v786_v0  ;;  %v631_v3 = vadd.f32 %v1524_v24, %v578_v1  ;;  %v639_v4 = vadd.f32 %v1524_v24, %v598_v2  ;;  %v540_v5 = vpop.f32.mrf.mxu0  ;;  %v560_v6 = vpop.f32.mrf.mxu1 }
  0xdd   : > { %v616_v7 = vadd.f32 %v1524_v24, %v540_v5  ;;  %v624_v8 = vadd.f32 %v1524_v24, %v560_v6 }
  0xde   : > { %vm730_vm10 = vcmp.ge.f32.partialorder %v631_v3, 0.0  ;;  %v762_v9 = vmul.f32 0.2, %v631_v3  ;;  %vm738_vm11 = vcmp.ge.f32.partialorder %v639_v4, 0.0  ;;  %v770_v10 = vmul.f32 0.2, %v639_v4 }
  0xdf   : > { %vm715_vm12 = vcmp.ge.f32.partialorder %v616_v7, 0.0  ;;  %v747_v11 = vmul.f32 0.2, %v616_v7  ;;  %vm723_vm13 = vcmp.ge.f32.partialorder %v624_v8, 0.0  ;;  %v755_v12 = vmul.f32 0.2, %v624_v8 }
  0xe0   : > { %v794_v13 = vsel %vm730_vm10, %v631_v3, %v762_v9  ;;  %v802_v14 = vsel %vm738_vm11, %v639_v4, %v770_v10 }
  0xe1   : > { %826 = vst [vmem:[%s1529_s27 + $0x90] sm:$0xff] %v794_v13  ;;  %v779_v15 = vsel %vm715_vm12, %v616_v7, %v747_v11  ;;  %v787_v16 = vsel %vm723_vm13, %v624_v8, %v755_v12 }
  0xe2   : > { %834 = vst [vmem:[%s1529_s27 + $0xd0] sm:$0xff] %v802_v14 }
  0xe3   : > { %811 = vst [vmem:[%s1529_s27 + $0x18] sm:$0xff] %v779_v15  ;;  %v580_v17 = vpop.f32.mrf.mxu2  ;;  %v600_v18 = vpop.f32.mrf.mxu3 }
  0xe4   : > { %819 = vst [vmem:[%s1529_s27 + $0x58] sm:$0xff] %v787_v16  ;;  %v632_v19 = vadd.f32 %v1524_v24, %v580_v17  ;;  %v640_v20 = vadd.f32 %v1524_v24, %v600_v18  ;;  %v543_v21 = vpop.f32.mrf.mxu0  ;;  %v563_v22 = vpop.f32.mrf.mxu1 }
  0xe5   : > { %v617_v23 = vadd.f32 %v1524_v24, %v543_v21  ;;  %v625_v25 = vadd.f32 %v1524_v24, %v563_v22 }
  0xe6   : > { %vm731_vm14 = vcmp.ge.f32.partialorder %v632_v19, 0.0  ;;  %v763_v26 = vmul.f32 0.2, %v632_v19  ;;  %vm739_vm15 = vcmp.ge.f32.partialorder %v640_v20, 0.0  ;;  %v771_v27 = vmul.f32 0.2, %v640_v20 }
  0xe7   : > { %vm716_vm0 = vcmp.ge.f32.partialorder %v617_v23, 0.0  ;;  %v748_v28 = vmul.f32 0.2, %v617_v23  ;;  %vm724_vm1 = vcmp.ge.f32.partialorder %v625_v25, 0.0  ;;  %v756_v29 = vmul.f32 0.2, %v625_v25 }
  0xe8   : > { %v795_v30 = vsel %vm731_vm14, %v632_v19, %v763_v26  ;;  %v803_v31 = vsel %vm739_vm15, %v640_v20, %v771_v27 }
  0xe9   : > { %827 = vst [vmem:[%s1529_s27 + $0x98] sm:$0xff] %v795_v30  ;;  %v780_v32 = vsel %vm716_vm0, %v617_v23, %v748_v28  ;;  %v788_v33 = vsel %vm724_vm1, %v625_v25, %v756_v29 }
  0xea   : > { %835 = vst [vmem:[%s1529_s27 + $0xd8] sm:$0xff] %v803_v31 }
  0xeb   : > { %812 = vst [vmem:[%s1529_s27 + $0x20] sm:$0xff] %v780_v32  ;;  %v583_v34 = vpop.f32.mrf.mxu2  ;;  %v603_v35 = vpop.f32.mrf.mxu3 }
  0xec   : > { %820 = vst [vmem:[%s1529_s27 + $0x60] sm:$0xff] %v788_v33  ;;  %v633_v36 = vadd.f32 %v1524_v24, %v583_v34  ;;  %v641_v37 = vadd.f32 %v1524_v24, %v603_v35  ;;  %v545_v38 = vpop.f32.mrf.mxu0  ;;  %v565_v39 = vpop.f32.mrf.mxu1 }
  0xed   : > { %v618_v40 = vadd.f32 %v1524_v24, %v545_v38  ;;  %v626_v41 = vadd.f32 %v1524_v24, %v565_v39 }
  0xee   : > { %vm732_vm2 = vcmp.ge.f32.partialorder %v633_v36, 0.0  ;;  %v764_v42 = vmul.f32 0.2, %v633_v36  ;;  %vm740_vm3 = vcmp.ge.f32.partialorder %v641_v37, 0.0  ;;  %v772_v43 = vmul.f32 0.2, %v641_v37 }
  0xef   : > { %vm717_vm4 = vcmp.ge.f32.partialorder %v618_v40, 0.0  ;;  %v749_v44 = vmul.f32 0.2, %v618_v40  ;;  %vm725_vm5 = vcmp.ge.f32.partialorder %v626_v41, 0.0  ;;  %v757_v45 = vmul.f32 0.2, %v626_v41 }
  0xf0   : > { %v796_v46 = vsel %vm732_vm2, %v633_v36, %v764_v42  ;;  %v804_v47 = vsel %vm740_vm3, %v641_v37, %v772_v43 }
  0xf1   : > { %828 = vst [vmem:[%s1529_s27 + $0xa0] sm:$0xff] %v796_v46  ;;  %v781_v48 = vsel %vm717_vm4, %v618_v40, %v749_v44  ;;  %v789_v49 = vsel %vm725_vm5, %v626_v41, %v757_v45 }
  0xf2   : > { %836 = vst [vmem:[%s1529_s27 + $0xe0] sm:$0xff] %v804_v47 }
  0xf3   : > { %813 = vst [vmem:[%s1529_s27 + $0x28] sm:$0xff] %v781_v48  ;;  %v585_v50 = vpop.f32.mrf.mxu2  ;;  %v605_v51 = vpop.f32.mrf.mxu3 }
  0xf4   : > { %821 = vst [vmem:[%s1529_s27 + $0x68] sm:$0xff] %v789_v49  ;;  %v634_v52 = vadd.f32 %v1524_v24, %v585_v50  ;;  %v642_v53 = vadd.f32 %v1524_v24, %v605_v51  ;;  %v548_v54 = vpop.f32.mrf.mxu0  ;;  %v568_v55 = vpop.f32.mrf.mxu1 }
  0xf5   : > { %v619_v56 = vadd.f32 %v1524_v24, %v548_v54  ;;  %v627_v57 = vadd.f32 %v1524_v24, %v568_v55 }
  0xf6   : > { %vm733_vm6 = vcmp.ge.f32.partialorder %v634_v52, 0.0  ;;  %v765_v58 = vmul.f32 0.2, %v634_v52  ;;  %vm741_vm7 = vcmp.ge.f32.partialorder %v642_v53, 0.0  ;;  %v773_v59 = vmul.f32 0.2, %v642_v53 }
  0xf7   : > { %vm718_vm8 = vcmp.ge.f32.partialorder %v619_v56, 0.0  ;;  %v750_v60 = vmul.f32 0.2, %v619_v56  ;;  %vm726_vm9 = vcmp.ge.f32.partialorder %v627_v57, 0.0  ;;  %v758_v61 = vmul.f32 0.2, %v627_v57 }
  0xf8   : > { %v797_v62 = vsel %vm733_vm6, %v634_v52, %v765_v58  ;;  %v805_v63 = vsel %vm741_vm7, %v642_v53, %v773_v59 }
  0xf9   : > { %829 = vst [vmem:[%s1529_s27 + $0xa8] sm:$0xff] %v797_v62  ;;  %v782_v0 = vsel %vm718_vm8, %v619_v56, %v750_v60  ;;  %v790_v1 = vsel %vm726_vm9, %v627_v57, %v758_v61 }
  0xfa   : > { %837 = vst [vmem:[%s1529_s27 + $0xe8] sm:$0xff] %v805_v63 }
  0xfb   : > { %814 = vst [vmem:[%s1529_s27 + $0x30] sm:$0xff] %v782_v0  ;;  %v588_v2 = vpop.f32.mrf.mxu2  ;;  %v608_v3 = vpop.f32.mrf.mxu3 }
  0xfc   : > { %822 = vst [vmem:[%s1529_s27 + $0x70] sm:$0xff] %v790_v1  ;;  %v635_v4 = vadd.f32 %v1524_v24, %v588_v2  ;;  %v643_v5 = vadd.f32 %v1524_v24, %v608_v3  ;;  %v550_v6 = vpop.f32.mrf.mxu0  ;;  %v570_v7 = vpop.f32.mrf.mxu1 }
  0xfd   : > { %v620_v8 = vadd.f32 %v1524_v24, %v550_v6  ;;  %v628_v9 = vadd.f32 %v1524_v24, %v570_v7 }
  0xfe   : > { %vm734_vm10 = vcmp.ge.f32.partialorder %v635_v4, 0.0  ;;  %v766_v10 = vmul.f32 0.2, %v635_v4  ;;  %vm742_vm11 = vcmp.ge.f32.partialorder %v643_v5, 0.0  ;;  %v774_v11 = vmul.f32 0.2, %v643_v5 }
  0xff   : > { %vm719_vm12 = vcmp.ge.f32.partialorder %v620_v8, 0.0  ;;  %v751_v12 = vmul.f32 0.2, %v620_v8  ;;  %vm727_vm13 = vcmp.ge.f32.partialorder %v628_v9, 0.0  ;;  %v759_v13 = vmul.f32 0.2, %v628_v9 }
 0x100   : > { %v798_v14 = vsel %vm734_vm10, %v635_v4, %v766_v10  ;;  %v806_v15 = vsel %vm742_vm11, %v643_v5, %v774_v11 }
 0x101   : > { %830 = vst [vmem:[%s1529_s27 + $0xb0] sm:$0xff] %v798_v14  ;;  %v783_v16 = vsel %vm719_vm12, %v620_v8, %v751_v12  ;;  %v791_v17 = vsel %vm727_vm13, %v628_v9, %v759_v13 }
 0x102   : > { %838 = vst [vmem:[%s1529_s27 + $0xf0] sm:$0xff] %v806_v15 }
 0x103   : > { %815 = vst [vmem:[%s1529_s27 + $0x38] sm:$0xff] %v783_v16  ;;  %v590_v18 = vpop.f32.mrf.mxu2  ;;  %v610_v19 = vpop.f32.mrf.mxu3 }
 0x104   : > { %823 = vst [vmem:[%s1529_s27 + $0x78] sm:$0xff] %v791_v17  ;;  %v636_v20 = vadd.f32 %v1524_v24, %v590_v18  ;;  %v644_v21 = vadd.f32 %v1524_v24, %v610_v19 }
 0x106   : > { %vm735_vm14 = vcmp.ge.f32.partialorder %v636_v20, 0.0  ;;  %v767_v22 = vmul.f32 0.2, %v636_v20  ;;  %vm743_vm15 = vcmp.ge.f32.partialorder %v644_v21, 0.0  ;;  %v775_v23 = vmul.f32 0.2, %v644_v21 }
 0x108   : > { %v799_v25 = vsel %vm735_vm14, %v636_v20, %v767_v22  ;;  %v807_v26 = vsel %vm743_vm15, %v644_v21, %v775_v23 }
 0x109   : > { %831 = vst [vmem:[%s1529_s27 + $0xb8] sm:$0xff] %v799_v25 }
 0x10a   : > { %839 = vst [vmem:[%s1529_s27 + $0xf8] sm:$0xff] %v807_v26 }
 0x10b   : > { %1300 = shalt.err (!%p1297_p0)
}
 0x10c   : > { %s1364_s6 = smov 128   ;;  %s1365_s1 = smov 8  }
 0x10d   : > { %1141 = dma.vmem_to_hbm [thread:$0]  (%p1468_p5), %s855_s10, 4096, %s857_s24, %s841_s25, %s1364_s6, %s1364_s6, %s1365_s1  }
 0x10e PF: > { %s871_s20 = sand.u32 1, %s1339_s12   ;;  %p1152_p3 = pnand %p976_p11, %p1435_p6 }
 0x10f   : > { %s872_s22 = scalar_lea.sflag [#allocation5], %s871_s20 }
 0x110   : > { %p1153_p7 = pneg %p1152_p3 }
 0x112   : > { %1334 = dma.done.wait (%p1153_p7), %s872_s22, 4096  }
 0x113   : > { %1336 = vsyncadd (%p1153_p7), %s872_s22, 4294963200  ;;  %s20_s17 = sadd.s32 1, %s1359_s17   ;;  %s1647_s12 = smov %s1343_s13 }
 0x114   : > { %p17_p9 = scmp.ge.s32.totalorder %s20_s17, 4   ;;  %s1648_s13 = smov %s1347_s14 }
 0x115   : > { %s1649_s14 = smov %s1477_s18  ;;  %s1650_s15 = smov %s1355_s16 }
 0x116   : > { %s1651_s16 = smov %s1653_s5  ;;  %19 = sbr.rel (!%p17_p9) target bundleno = 9 (0x9), region = 93 }
 0x11b   :  { %878 = vsyncpa [#allocation4], 1 }
 0x11c   :  { %880 = vsyncpa [#allocation4 + $0x1], 1 }
 0x11d   :  { %881 = vsyncpa [#allocation7], 1 }
 0x11e   :  { %882 = vsyncpa [#allocation5], 1 }
 0x11f   :  { %884 = vsyncpa [#allocation5 + $0x1], 1 }

</bundles_post_ra>
